<compile_context>
chip_gen: v6e
topology: v6e:2x2x1
jax: 0.10.0
libtpu: 0.0.40
codegen_flags: <defaults>
</compile_context>

<pallas_src>
import jax
import jax.numpy as jnp
from jax.experimental import pallas as pl
from jax.experimental.pallas import tpu as pltpu

_BN_EPS = 1e-5
_TM_BASE = 1024  # lane-tile over M; multiple of 128, sized for v7x VMEM


# ----------------------------------------------------------------------------
# Pallas kernel: one M-tile of  relu( (W*scale) @ patches + bias )
# ----------------------------------------------------------------------------
def _gemm_bias_relu_kernel(w_ref, a_ref, b_ref, o_ref):
    # w_ref: (Cout, K)  bf16, BN scale already folded in
    # a_ref: (K, TM)    bf16 transposed im2col patches (M on lanes)
    # b_ref: (Cout, 1)  f32 folded BN bias
    # o_ref: (Cout, TM)
    acc = jnp.dot(w_ref[...], a_ref[...], preferred_element_type=jnp.float32)
    o_ref[...] = jnp.maximum(acc + b_ref[...], 0.0).astype(o_ref.dtype)


# ----------------------------------------------------------------------------
# Glue: transposed im2col (K, M) from channel-major (C, N, H, W) input.
# ----------------------------------------------------------------------------
def _im2col_T(x_cnhw, pad_h, pad_w, compute_dtype):
    C, N, H, W = x_cnhw.shape
    xp = jnp.pad(x_cnhw, ((0, 0), (0, 0), (pad_h, pad_h), (pad_w, pad_w)))
    xp = xp.astype(compute_dtype)
    Hp, Wp = H + 2 * pad_h, W + 2 * pad_w
    Ho = (Hp - 3) // 2 + 1
    Wo = (Wp - 3) // 2 + 1
    # K ordering is (kh, kw, ci) to match the OIHW -> (Cout, kh, kw, ci) weight reshape.
    slices = [
        xp[:, :, kh : kh + 2 * (Ho - 1) + 1 : 2, kw : kw + 2 * (Wo - 1) + 1 : 2]
        for kh in range(3)
        for kw in range(3)
    ]  # each (C, N, Ho, Wo)
    a_t = jnp.stack(slices, axis=0).reshape(9 * C, N * Ho * Wo)  # (K, M)
    return a_t, Ho, Wo


def _fold_bn(gamma, beta, mean, var):
    scale = gamma / jnp.sqrt(var + _BN_EPS)
    bias = beta - mean * scale
    return scale, bias


def _conv_bn_relu_T(x_cnhw, w_oihw, scale, bias, pad_h, pad_w, out_dtype):
    """Conv2d(3x3, s=2, bias=False) + BN(eval) + ReLU on channel-major input.

    Input:  (Cin, N, H, W)   Output: (Cout, N, Ho, Wo)
    """
    Cin, N = x_cnhw.shape[0], x_cnhw.shape[1]
    Cout = w_oihw.shape[0]

    a_t, Ho, Wo = _im2col_T(x_cnhw, pad_h, pad_w, jnp.bfloat16)
    K, M = a_t.shape

    # Fold BN scale into the weights; OIHW -> (Cout, kh, kw, ci) -> (Cout, K).
    w_mat = jnp.transpose(w_oihw, (0, 2, 3, 1)).reshape(Cout, K)
    w_mat = (w_mat * scale[:, None]).astype(jnp.bfloat16)
    bias_col = bias.astype(jnp.float32).reshape(Cout, 1)

    # Pad K to a multiple of 16 (bf16 sublane packing) with zero rows/cols.
    K_pad = -(-K // 16) * 16
    if K_pad != K:
        a_t = jnp.pad(a_t, ((0, K_pad - K), (0, 0)))
        w_mat = jnp.pad(w_mat, ((0, 0), (0, K_pad - K)))

    # Lane tile over M (multiple of 128), padded so the grid divides evenly.
    tm = min(_TM_BASE, -(-M // 128) * 128)
    M_pad = -(-M // tm) * tm
    if M_pad != M:
        a_t = jnp.pad(a_t, ((0, 0), (0, M_pad - M)))
    grid = (M_pad // tm,)

    # Explicit VMEM budget: double-buffered a/out tiles + weights + bias, 2x headroom.
    out_bytes = jnp.dtype(out_dtype).itemsize
    vmem_need = (2 * K_pad * tm * 2 + 2 * Cout * tm * out_bytes
                 + 2 * Cout * K_pad * 2 + 2 * Cout * 4)
    vmem_limit = int(min(max(2 * vmem_need, 8 * 1024 * 1024), 64 * 1024 * 1024))

    out = pl.pallas_call(
        _gemm_bias_relu_kernel,
        out_shape=jax.ShapeDtypeStruct((Cout, M_pad), out_dtype),
        grid=grid,
        in_specs=[
            pl.BlockSpec((Cout, K_pad), lambda i: (0, 0)),   # weights (resident)
            pl.BlockSpec((K_pad, tm), lambda i: (0, i)),     # patch tile (lane-dense)
            pl.BlockSpec((Cout, 1), lambda i: (0, 0)),       # folded bias
        ],
        out_specs=pl.BlockSpec((Cout, tm), lambda i: (0, i)),  # lane-dense stores
        compiler_params=pltpu.CompilerParams(
            dimension_semantics=("parallel",),  # shard M tiles across TCs (v7x)
            vmem_limit_bytes=vmem_limit,
        ),
    )(w_mat, a_t, bias_col)

    return out[:, :M].reshape(Cout, N, Ho, Wo)


@jax.jit
def stem_encoder(x_nchw, params):
    """Forward pass equivalent to StemEncoder.forward (BN in eval mode)."""
    s1, b1 = _fold_bn(params["gamma1"], params["beta1"], params["mean1"], params["var1"])
    s2, b2 = _fold_bn(params["gamma2"], params["beta2"], params["mean2"], params["var2"])

    x = jnp.transpose(x_nchw, (1, 0, 2, 3))  # NCHW -> CNHW (channel-major)

    # Layer 1: Conv2d(Cin, 64, k=3, s=2, padding=(0, 1), bias=False) + BN + ReLU
    y = _conv_bn_relu_T(x, params["w1"], s1, b1, 0, 1, jnp.bfloat16)
    # Layer 2: Conv2d(64, 64, k=3, s=2, padding=1, bias=False) + BN + ReLU
    y = _conv_bn_relu_T(y, params["w2"], s2, b2, 1, 1, jnp.float32)

    return jnp.transpose(y, (1, 0, 2, 3))  # CNHW -> NCHW


# ----------------------------------------------------------------------------
# Pure-JAX reference (lax conv, f32) for correctness checking.
# ----------------------------------------------------------------------------
def _ref_forward(x_nchw, params):
    def conv_bn_relu_ref(x, w, gamma, beta, mean, var, pad):
        y = jax.lax.conv_general_dilated(
            x, w, window_strides=(2, 2), padding=pad,
            dimension_numbers=("NCHW", "OIHW", "NCHW"),
        )
        scale, bias = _fold_bn(gamma, beta, mean, var)
        y = y * scale[None, :, None, None] + bias[None, :, None, None]
        return jnp.maximum(y, 0.0)

    y = conv_bn_relu_ref(
        x_nchw, params["w1"], params["gamma1"], params["beta1"],
        params["mean1"], params["var1"], ((0, 0), (1, 1)),
    )
    y = conv_bn_relu_ref(
        y, params["w2"], params["gamma2"], params["beta2"],
        params["mean2"], params["var2"], ((1, 1), (1, 1)),
    )
    return y


def _init_params(key, audio_channels):
    keys = jax.random.split(key, 10)
    return {
        "w1": 0.1 * jax.random.normal(keys[0], (64, audio_channels, 3, 3), jnp.float32),
        "w2": 0.1 * jax.random.normal(keys[1], (64, 64, 3, 3), jnp.float32),
        "gamma1": 1.0 + 0.1 * jax.random.normal(keys[2], (64,), jnp.float32),
        "beta1": 0.1 * jax.random.normal(keys[3], (64,), jnp.float32),
        "mean1": 0.1 * jax.random.normal(keys[4], (64,), jnp.float32),
        "var1": jax.random.uniform(keys[5], (64,), jnp.float32, 0.5, 1.5),
        "gamma2": 1.0 + 0.1 * jax.random.normal(keys[6], (64,), jnp.float32),
        "beta2": 0.1 * jax.random.normal(keys[7], (64,), jnp.float32),
        "mean2": 0.1 * jax.random.normal(keys[8], (64,), jnp.float32),
        "var2": jax.random.uniform(keys[9], (64,), jnp.float32, 0.5, 1.5),
    }


if __name__ == "__main__":
    key = jax.random.PRNGKey(0)
    k_x, k_p = jax.random.split(key)

    # Spectrogram input: batch=2, audio_channels=4, n_freqs=17 (2^4 + 1), frames=16.
    audio_channels = 4
    x = jax.random.normal(k_x, (2, audio_channels, 17, 16), jnp.float32)
    params = _init_params(k_p, audio_channels)

    out = jax.block_until_ready(stem_encoder(x, params))
    ref = _ref_forward(x, params)

    assert out.shape == ref.shape, (out.shape, ref.shape)
    # bf16 MXU operands -> relaxed tolerance vs. the f32 reference (see perf review).
    rel_err = jnp.linalg.norm(out - ref) / (jnp.linalg.norm(ref) + 1e-12)
    assert rel_err < 2e-2, float(rel_err)
    assert jnp.allclose(out, ref, atol=1e-1, rtol=1e-1), float(jnp.max(jnp.abs(out - ref)))
    print("KERNEL_OK")
</pallas_src>

<mosaic_0001>
module attributes {stable_mosaic.version = 11 : i64} {
  func.func @_gemm_bias_relu_kernel(%arg0: i32, %arg1: memref<64x48xbf16, #tpu.memory_space<vmem>>, %arg2: memref<48x128xbf16, #tpu.memory_space<vmem>>, %arg3: memref<64x1xf32, #tpu.memory_space<vmem>>, %arg4: memref<64x128xbf16, #tpu.memory_space<vmem>>) attributes {dimension_semantics = [#tpu.dimension_semantics<parallel>], iteration_bounds = array<i64: 1>, scalar_prefetch = 0 : i64, scratch_operands = 0 : i64, tpu.core_type = #tpu.core_type<tc>, window_params = [{pipeline_mode = #tpu.pipeline_mode<synchronous>, transform_indices = @transform_0, window_bounds = array<i64: 64, 48>}, {transform_indices = @transform_1, window_bounds = array<i64: 48, 128>}, {pipeline_mode = #tpu.pipeline_mode<synchronous>, transform_indices = @transform_2, window_bounds = array<i64: 64, 1>}, {transform_indices = @transform_3, window_bounds = array<i64: 64, 128>}]} {
    %c0 = arith.constant 0 : index
    %c0_0 = arith.constant 0 : index
    %0 = vector.load %arg1[%c0, %c0_0] : memref<64x48xbf16, #tpu.memory_space<vmem>>, vector<64x48xbf16>
    %c0_1 = arith.constant 0 : index
    %c0_2 = arith.constant 0 : index
    %1 = vector.load %arg2[%c0_1, %c0_2] : memref<48x128xbf16, #tpu.memory_space<vmem>>, vector<48x128xbf16>
    %cst = arith.constant dense<0.000000e+00> : vector<64x128xf32>
    %2 = tpu.matmul %0, %1, %cst {dimension_numbers = #tpu.dot_dimension_numbers<[1], [0], [0], [1], [0, 0, 1, 1], [], []>} : vector<64x48xbf16>, vector<48x128xbf16>, vector<64x128xf32> -> vector<64x128xf32>
    %c0_3 = arith.constant 0 : index
    %c0_4 = arith.constant 0 : index
    %3 = vector.load %arg3[%c0_3, %c0_4] : memref<64x1xf32, #tpu.memory_space<vmem>>, vector<64x1xf32>
    %4 = vector.broadcast %3 : vector<64x1xf32> to vector<64x128xf32>
    %5 = arith.addf %2, %4 : vector<64x128xf32>
    %cst_5 = arith.constant 0.000000e+00 : f32
    %6 = vector.broadcast %cst_5 : f32 to vector<64x128xf32>
    %7 = arith.maximumf %5, %6 : vector<64x128xf32>
    %8 = arith.truncf %7 : vector<64x128xf32> to vector<64x128xbf16>
    %c0_6 = arith.constant 0 : index
    %c0_7 = arith.constant 0 : index
    %9 = vector.load %arg4[%c0_6, %c0_7] : memref<64x128xbf16, #tpu.memory_space<vmem>>, vector<64x128xbf16>
    tpu.vector_store %arg4[%c0_6, %c0_7], %8 {strides = array<i32>} : memref<64x128xbf16, #tpu.memory_space<vmem>>, vector<64x128xbf16>,
    return
  }
  func.func @transform_0(%arg0: i32) -> (i32, i32) {
    %c0_i32 = arith.constant 0 : i32
    %c0_i32_0 = arith.constant 0 : i32
    %c0_i32_1 = arith.constant 0 : i32
    return %c0_i32, %c0_i32_0 : i32, i32
  }
  func.func @transform_1(%arg0: i32) -> (i32, i32) {
    %c0_i32 = arith.constant 0 : i32
    %c0_i32_0 = arith.constant 0 : i32
    return %c0_i32, %arg0 : i32, i32
  }
  func.func @transform_2(%arg0: i32) -> (i32, i32) {
    %c0_i32 = arith.constant 0 : i32
    %c0_i32_0 = arith.constant 0 : i32
    %c0_i32_1 = arith.constant 0 : i32
    return %c0_i32, %c0_i32_0 : i32, i32
  }
  func.func @transform_3(%arg0: i32) -> (i32, i32) {
    %c0_i32 = arith.constant 0 : i32
    %c0_i32_0 = arith.constant 0 : i32
    return %c0_i32, %arg0 : i32, i32
  }
}

module attributes {stable_mosaic.version = 11 : i64} {
  func.func @_gemm_bias_relu_kernel(%arg0: i32, %arg1: memref<64x576xbf16, #tpu.memory_space<vmem>>, %arg2: memref<576x128xbf16, #tpu.memory_space<vmem>>, %arg3: memref<64x1xf32, #tpu.memory_space<vmem>>, %arg4: memref<64x128xf32, #tpu.memory_space<vmem>>) attributes {dimension_semantics = [#tpu.dimension_semantics<parallel>], iteration_bounds = array<i64: 1>, scalar_prefetch = 0 : i64, scratch_operands = 0 : i64, tpu.core_type = #tpu.core_type<tc>, window_params = [{pipeline_mode = #tpu.pipeline_mode<synchronous>, transform_indices = @transform_0, window_bounds = array<i64: 64, 576>}, {transform_indices = @transform_1, window_bounds = array<i64: 576, 128>}, {pipeline_mode = #tpu.pipeline_mode<synchronous>, transform_indices = @transform_2, window_bounds = array<i64: 64, 1>}, {transform_indices = @transform_3, window_bounds = array<i64: 64, 128>}]} {
    %c0 = arith.constant 0 : index
    %c0_0 = arith.constant 0 : index
    %0 = vector.load %arg1[%c0, %c0_0] : memref<64x576xbf16, #tpu.memory_space<vmem>>, vector<64x576xbf16>
    %c0_1 = arith.constant 0 : index
    %c0_2 = arith.constant 0 : index
    %1 = vector.load %arg2[%c0_1, %c0_2] : memref<576x128xbf16, #tpu.memory_space<vmem>>, vector<576x128xbf16>
    %cst = arith.constant dense<0.000000e+00> : vector<64x128xf32>
    %2 = tpu.matmul %0, %1, %cst {dimension_numbers = #tpu.dot_dimension_numbers<[1], [0], [0], [1], [0, 0, 1, 1], [], []>} : vector<64x576xbf16>, vector<576x128xbf16>, vector<64x128xf32> -> vector<64x128xf32>
    %c0_3 = arith.constant 0 : index
    %c0_4 = arith.constant 0 : index
    %3 = vector.load %arg3[%c0_3, %c0_4] : memref<64x1xf32, #tpu.memory_space<vmem>>, vector<64x1xf32>
    %4 = vector.broadcast %3 : vector<64x1xf32> to vector<64x128xf32>
    %5 = arith.addf %2, %4 : vector<64x128xf32>
    %cst_5 = arith.constant 0.000000e+00 : f32
    %6 = vector.broadcast %cst_5 : f32 to vector<64x128xf32>
    %7 = arith.maximumf %5, %6 : vector<64x128xf32>
    %c0_6 = arith.constant 0 : index
    %c0_7 = arith.constant 0 : index
    %8 = vector.load %arg4[%c0_6, %c0_7] : memref<64x128xf32, #tpu.memory_space<vmem>>, vector<64x128xf32>
    tpu.vector_store %arg4[%c0_6, %c0_7], %7 {strides = array<i32>} : memref<64x128xf32, #tpu.memory_space<vmem>>, vector<64x128xf32>,
    return
  }
  func.func @transform_0(%arg0: i32) -> (i32, i32) {
    %c0_i32 = arith.constant 0 : i32
    %c0_i32_0 = arith.constant 0 : i32
    %c0_i32_1 = arith.constant 0 : i32
    return %c0_i32, %c0_i32_0 : i32, i32
  }
  func.func @transform_1(%arg0: i32) -> (i32, i32) {
    %c0_i32 = arith.constant 0 : i32
    %c0_i32_0 = arith.constant 0 : i32
    return %c0_i32, %arg0 : i32, i32
  }
  func.func @transform_2(%arg0: i32) -> (i32, i32) {
    %c0_i32 = arith.constant 0 : i32
    %c0_i32_0 = arith.constant 0 : i32
    %c0_i32_1 = arith.constant 0 : i32
    return %c0_i32, %c0_i32_0 : i32, i32
  }
  func.func @transform_3(%arg0: i32) -> (i32, i32) {
    %c0_i32 = arith.constant 0 : i32
    %c0_i32_0 = arith.constant 0 : i32
    return %c0_i32, %arg0 : i32, i32
  }
}

</mosaic_0001>

<bundles_post_ra>
// kernel: stem_encoder.2
= control target key start
LH: loop header
LB: loop body
LE: loop exit
PB: predicated region body
PF: predicated region fallthrough
CT: control target
= control target key end

     0   :  { %v332_v1 = vmov 0   ;;  %vm115_vm0 = vcmask 392192   ;;  %s414_s1 = inlined_call_operand.vmem [shape: bf16[48,128], index: 1, kind: input, shape index: {}]   ;;  %s415_s0 = inlined_call_operand.vmem [shape: bf16[64,48], index: 0, kind: input, shape index: {}]   ;;  %s416_s2 = inlined_call_operand.vmem [shape: f32[64,1], index: 2, kind: input, shape index: {}]   ;;  %s417_s3 = inlined_call_operand.vmem [shape: bf16[64,128], index: 3, kind: output, shape index: {}]  }
   0x1   :  { %v325_v0 = vld [vmem:[%s414_s1 + $0x10] sm:$0xff]   ;;  %324 = vset.pattern.permute.xlu1 %v332_v1  ;;  %323 = vset.pattern.permute.xlu0 %v332_v1  ;;  %v326_v2 = vld [vmem:[%s414_s1 + $0x8] sm:$0xff]   ;;  %v327_v3 = vld [vmem:[%s414_s1] sm:$0xff]  }
   0x2   :  { %302 = vmatprep.subr.bf16.mxu0 %v325_v0  ;;  %316 = vmatprep.subr.bf16.mxu1 %v325_v0  ;;  %v328_v4 = vld [vmem:[%s415_s0] sm:$0xff]   ;;  %v329_v5 = vld [vmem:[%s415_s0 + $0x10] sm:$0xff]   ;;  %v330_v8 = vld [vmem:[%s415_s0 + $0x8] sm:$0xff]  }
   0x3   :  { %303 = vmatpush3.bf16.msra.mxu0 %v325_v0  ;;  %319 = vmatpush3.bf16.msra.mxu1 %v325_v0  ;;  %v31_v6 = vld [vmem:[%s416_s2 + $0x10] sm:$0xff]  ;;  %v29_v7 = vld [vmem:[%s416_s2] sm:$0xff]  ;;  %v331_v9 = vld [vmem:[%s415_s0 + $0x18] sm:$0xff]  }
   0x4   :  { %304 = vmatprep.subr.bf16.mxu0 %v326_v2  ;;  %317 = vmatprep.subr.bf16.mxu1 %v326_v2  ;;  %v32_v10 = vld [vmem:[%s416_s2 + $0x18] sm:$0xff]  ;;  %v30_v11 = vld [vmem:[%s416_s2 + $0x8] sm:$0xff]  ;;  %v33_v13 = vld [vmem:[%s416_s2 + $0x20] sm:$0xff] }
   0x5   :  { %308 = vmatprep.mubr.msk.bf16.mxu0 %vm115_vm0, %v328_v4  ;;  %312 = vmatprep.mubr.msk.bf16.mxu1 %vm115_vm0, %v329_v5  ;;  %v34_v12 = vld [vmem:[%s416_s2 + $0x28] sm:$0xff]  ;;  %v36_v14 = vld [vmem:[%s416_s2 + $0x38] sm:$0xff]  ;;  %v35_v15 = vld [vmem:[%s416_s2 + $0x30] sm:$0xff] }
   0x6   :  { %49 = vperm.xlu1 %324, %v31_v6   ;;  %39 = vperm.xlu0 %323, %v29_v7  }
   0x7   :  { %305 = vmatpush3.bf16.msra.mxu0 %v326_v2  ;;  %320 = vmatpush3.bf16.msra.mxu1 %v326_v2 }
   0x8   :  { %306 = vmatprep.subr.bf16.mxu0 %v327_v3  ;;  %318 = vmatprep.subr.bf16.mxu1 %v327_v3 }
   0xa   :  { %54 = vperm.xlu1 %324, %v32_v10   ;;  %44 = vperm.xlu0 %323, %v30_v11  }
   0xb   :  { %307 = vmatpush3.bf16.msra.mxu0 %v327_v3  ;;  %321 = vmatpush3.bf16.msra.mxu1 %v327_v3 }
   0xe   :  { %309 = vmatmul.mubr.msk.bf16.vlgmr.msra.gmra.mxu0 %vm115_vm0, %v330_v8  ;;  %313 = vmatmul.mubr.msk.bf16.vlgmr.msra.gmra.mxu1 %vm115_vm0, %v331_v9 }
   0xf   :  { %64 = vperm.xlu1 %324, %v34_v12   ;;  %59 = vperm.xlu0 %323, %v33_v13  }
  0x13   :  { %74 = vperm.xlu1 %324, %v36_v14   ;;  %69 = vperm.xlu0 %323, %v35_v15  }
  0x81   :  { %v40_v16 = vpop.permute.xlu0 %39  ;;  %v50_v17 = vpop.permute.xlu1 %49 }
  0x85   :  { %v45_v18 = vpop.permute.xlu0 %44  ;;  %v55_v19 = vpop.permute.xlu1 %54 }
  0x8a   :  { %v60_v20 = vpop.permute.xlu0 %59  ;;  %v65_v21 = vpop.permute.xlu1 %64 }
  0x8e   :  { %v70_v24 = vpop.permute.xlu0 %69  ;;  %v75_v29 = vpop.permute.xlu1 %74 }
  0xce   :  { %v310_v22 = vpop.f32.mrf.mxu0  ;;  %v314_v23 = vpop.f32.mrf.mxu1 }
  0xcf   :  { %v171_v25 = vadd.f32 %v310_v22, %v50_v17  ;;  %v187_v26 = vadd.f32 %v314_v23, %v70_v24 }
  0xd0   :  { %v162_v27 = vpop.f32.mrf.mxu0  ;;  %v178_v28 = vpop.f32.mrf.mxu1 }
  0xd1   :  { %v163_v30 = vadd.f32 %v162_v27, %v40_v16  ;;  %v179_v31 = vadd.f32 %v178_v28, %v60_v20  ;;  %v195_v36 = vmax.f32 %v171_v25, 0.0  ;;  %v199_v37 = vmax.f32 %v187_v26, 0.0 }
  0xd2   :  { %v311_v32 = vpop.f32.mrf.mxu0  ;;  %v315_v33 = vpop.f32.mrf.mxu1 }
  0xd3   :  { %v174_v34 = vadd.f32 %v311_v32, %v55_v19  ;;  %v190_v35 = vadd.f32 %v315_v33, %v75_v29  ;;  %v193_v44 = vmax.f32 %v163_v30, 0.0  ;;  %v197_v45 = vmax.f32 %v179_v31, 0.0 }
  0xd4   :  { %v165_v38 = vpop.f32.mrf.mxu0  ;;  %v181_v39 = vpop.f32.mrf.mxu1 }
  0xd5   :  { %v196_v40 = vmax.f32 %v174_v34, 0.0  ;;  %v200_v41 = vmax.f32 %v190_v35, 0.0  ;;  %v166_v42 = vadd.f32 %v165_v38, %v45_v18  ;;  %v182_v43 = vadd.f32 %v181_v39, %v65_v21 }
  0xd7   :  { %v280_v46 = vpack.c.bf16 %v196_v40, %v195_v36  ;;  %v290_v47 = vpack.c.bf16 %v200_v41, %v199_v37  ;;  %v194_v48 = vmax.f32 %v166_v42, 0.0  ;;  %v198_v49 = vmax.f32 %v182_v43, 0.0 }
  0xd9   :  { %292 = vst [vmem:[%s417_s3 + $0x8] sm:$0xff] %v280_v46   ;;  %294 = vst [vmem:[%s417_s3 + $0x18] sm:$0xff] %v290_v47   ;;  %v275_v50 = vpack.c.bf16 %v194_v48, %v193_v44  ;;  %v285_v51 = vpack.c.bf16 %v198_v49, %v197_v45 }
  0xdb   :  { %276 = vst [vmem:[%s417_s3] sm:$0xff] %v275_v50   ;;  %293 = vst [vmem:[%s417_s3 + $0x10] sm:$0xff] %v285_v51  }

// kernel: stem_encoder.3
= control target key start
LH: loop header
LB: loop body
LE: loop exit
PB: predicated region body
PF: predicated region fallthrough
CT: control target
= control target key end

     0   :  { %v942_v1 = vmov 0   ;;  %vm475_vm0 = vcmask 523264   ;;  %s1183_s1 = inlined_call_operand.vmem [shape: bf16[576,128], index: 1, kind: input, shape index: {}]   ;;  %s1184_s0 = inlined_call_operand.vmem [shape: bf16[64,576], index: 0, kind: input, shape index: {}]   ;;  %s1185_s2 = inlined_call_operand.vmem [shape: f32[64,1], index: 2, kind: input, shape index: {}]   ;;  %s1186_s3 = inlined_call_operand.vmem [shape: f32[64,128], index: 3, kind: output, shape index: {}]  }
   0x1   :  { %v878_v0 = vld [vmem:[%s1183_s1 + $0x78] sm:$0xff]   ;;  %876 = vset.pattern.permute.xlu0 %v942_v1  ;;  %877 = vset.pattern.permute.xlu1 %v942_v1  ;;  %v882_v5 = vld [vmem:[%s1183_s1 + $0x70] sm:$0xff]   ;;  %v886_v9 = vld [vmem:[%s1183_s1 + $0x68] sm:$0xff]  }
   0x2   :  { %v879_v2 = vld [vmem:[%s1183_s1 + $0xf8] sm:$0xff]   ;;  %763 = vmatprep.subr.bf16.mxu0 %v878_v0  ;;  %v883_v6 = vld [vmem:[%s1183_s1 + $0xf0] sm:$0xff]   ;;  %v887_v10 = vld [vmem:[%s1183_s1 + $0xe8] sm:$0xff]  }
   0x3   :  { %v880_v3 = vld [vmem:[%s1183_s1 + $0x38] sm:$0xff]   ;;  %803 = vmatprep.subr.bf16.mxu1 %v879_v2  ;;  %v884_v7 = vld [vmem:[%s1183_s1 + $0x30] sm:$0xff]   ;;  %v888_v11 = vld [vmem:[%s1183_s1 + $0x28] sm:$0xff]  }
   0x4   :  { %v881_v4 = vld [vmem:[%s1183_s1 + $0xb8] sm:$0xff]   ;;  %764 = vmatpush3.bf16.msra.mxu0 %v880_v3  ;;  %v885_v8 = vld [vmem:[%s1183_s1 + $0xb0] sm:$0xff]   ;;  %v889_v12 = vld [vmem:[%s1183_s1 + $0xa8] sm:$0xff]  }
   0x5   :  { %804 = vmatpush3.bf16.msra.mxu1 %v881_v4  ;;  %765 = vmatprep.subr.bf16.mxu0 %v882_v5  ;;  %v890_v13 = vld [vmem:[%s1183_s1 + $0x60] sm:$0xff]   ;;  %v894_v17 = vld [vmem:[%s1183_s1 + $0x58] sm:$0xff]   ;;  %v898_v21 = vld [vmem:[%s1183_s1 + $0x50] sm:$0xff]  }
   0x6   :  { %805 = vmatprep.subr.bf16.mxu1 %v883_v6  ;;  %v891_v14 = vld [vmem:[%s1183_s1 + $0xe0] sm:$0xff]   ;;  %v895_v18 = vld [vmem:[%s1183_s1 + $0xd8] sm:$0xff]   ;;  %v899_v22 = vld [vmem:[%s1183_s1 + $0xd0] sm:$0xff]  }
   0x7   :  { %v892_v15 = vld [vmem:[%s1183_s1 + $0x20] sm:$0xff]   ;;  %v896_v19 = vld [vmem:[%s1183_s1 + $0x18] sm:$0xff]   ;;  %v900_v23 = vld [vmem:[%s1183_s1 + $0x10] sm:$0xff]  }
   0x8   :  { %766 = vmatpush3.bf16.msra.mxu0 %v884_v7  ;;  %v893_v16 = vld [vmem:[%s1183_s1 + $0xa0] sm:$0xff]   ;;  %v897_v20 = vld [vmem:[%s1183_s1 + $0x98] sm:$0xff]   ;;  %v901_v24 = vld [vmem:[%s1183_s1 + $0x90] sm:$0xff]  }
   0x9   :  { %806 = vmatpush3.bf16.msra.mxu1 %v885_v8  ;;  %767 = vmatprep.subr.bf16.mxu0 %v886_v9  ;;  %v902_v25 = vld [vmem:[%s1183_s1 + $0x48] sm:$0xff]   ;;  %v906_v29 = vld [vmem:[%s1183_s1 + $0x40] sm:$0xff]   ;;  %v916_v37 = vld [vmem:[%s1183_s1 + $0x118] sm:$0xff]  }
   0xa   :  { %807 = vmatprep.subr.bf16.mxu1 %v887_v10  ;;  %v903_v26 = vld [vmem:[%s1183_s1 + $0xc8] sm:$0xff]   ;;  %v907_v30 = vld [vmem:[%s1183_s1 + $0xc0] sm:$0xff]   ;;  %v923_v40 = vld [vmem:[%s1183_s1 + $0x110] sm:$0xff]  }
   0xb   :  { %v904_v27 = vld [vmem:[%s1183_s1 + $0x8] sm:$0xff]   ;;  %v908_v31 = vld [vmem:[%s1183_s1] sm:$0xff]   ;;  %v926_v44 = vld [vmem:[%s1184_s0 + $0x5c] ss:$20 sps:$4 sm:$0xff]  }
   0xc   :  { %768 = vmatpush3.bf16.msra.mxu0 %v888_v11  ;;  %v905_v28 = vld [vmem:[%s1183_s1 + $0x88] sm:$0xff]   ;;  %v909_v32 = vld [vmem:[%s1183_s1 + $0x80] sm:$0xff]   ;;  %v931_v49 = vld [vmem:[%s1184_s0 + $0x7c] ss:$20 sps:$4 sm:$0xff]  }
   0xd   :  { %808 = vmatpush3.bf16.msra.mxu1 %v889_v12  ;;  %769 = vmatprep.subr.bf16.mxu0 %v890_v13  ;;  %v910_v33 = vld [vmem:[%s1184_s0] ss:$20 sps:$4 sm:$0xff]   ;;  %v912_v34 = vld [vmem:[%s1184_s0 + $0x4] ss:$20 sps:$4 sm:$0xff]   ;;  %v913_v35 = vld [vmem:[%s1184_s0 + $0x8] ss:$20 sps:$4 sm:$0xff]  }
   0xe   :  { %809 = vmatprep.subr.bf16.mxu1 %v891_v14  ;;  %v915_v36 = vld [vmem:[%s1184_s0 + $0xc] ss:$20 sps:$4 sm:$0xff]   ;;  %520 = vmatprep.mubr.bf16.mxu0 %v912_v34  ;;  %v919_v39 = vld [vmem:[%s1184_s0 + $0x34] ss:$20 sps:$4 sm:$0xff]   ;;  %v922_v42 = vld [vmem:[%s1184_s0 + $0x30] ss:$20 sps:$4 sm:$0xff]  }
   0xf   :  { %585 = vmatprep.mubr.bf16.mxu1 %v915_v36  ;;  %v917_v38 = vld [vmem:[%s1184_s0 + $0x2c] ss:$20 sps:$4 sm:$0xff]   ;;  %v921_v41 = vld [vmem:[%s1184_s0 + $0x28] ss:$20 sps:$4 sm:$0xff]   ;;  %v928_v47 = vld [vmem:[%s1184_s0 + $0x50] ss:$20 sps:$4 sm:$0xff]  }
  0x10   :  { %770 = vmatpush3.bf16.msra.mxu0 %v892_v15  ;;  %v924_v43 = vld [vmem:[%s1184_s0 + $0x54] ss:$20 sps:$4 sm:$0xff]   ;;  %v937_v46 = vld [vmem:[%s1183_s1 + $0x100] sm:$0xff]   ;;  %v929_v48 = vld [vmem:[%s1184_s0 + $0x58] ss:$20 sps:$4 sm:$0xff]  }
  0x11   :  { %810 = vmatpush3.bf16.msra.mxu1 %v893_v16  ;;  %771 = vmatprep.subr.bf16.mxu0 %v894_v17  ;;  %v930_v45 = vld [vmem:[%s1183_s1 + $0x108] sm:$0xff]   ;;  %v933_v50 = vld [vmem:[%s1184_s0 + $0x84] ss:$20 sps:$4 sm:$0xff]   ;;  %v113_v52 = vld [vmem:[%s1185_s2 + $0x10] sm:$0xff] }
  0x12   :  { %811 = vmatprep.subr.bf16.mxu1 %v895_v18  ;;  %v111_v51 = vld [vmem:[%s1185_s2] sm:$0xff]  ;;  %v112_v53 = vld [vmem:[%s1185_s2 + $0x8] sm:$0xff]  ;;  %131 = vperm.xlu1 %877, %v113_v52   ;;  %v114_v54 = vld [vmem:[%s1185_s2 + $0x18] sm:$0xff] }
  0x13   :  { %121 = vperm.xlu0 %876, %v111_v51   ;;  %v935_v55 = vld [vmem:[%s1184_s0 + $0x78] ss:$20 sps:$4 sm:$0xff]   ;;  %v936_v56 = vld [vmem:[%s1184_s0 + $0x80] ss:$20 sps:$4 sm:$0xff]   ;;  %v938_v57 = vld [vmem:[%s1184_s0 + $0x10] ss:$20 sps:$4 sm:$0xff]  }
  0x14   :  { %772 = vmatpush3.bf16.msra.mxu0 %v896_v19  ;;  %v115_v58 = vld [vmem:[%s1185_s2 + $0x20] sm:$0xff]  ;;  %v116_v60 = vld [vmem:[%s1185_s2 + $0x28] sm:$0xff]  ;;  %v117_v61 = vld [vmem:[%s1185_s2 + $0x30] sm:$0xff] }
  0x15   :  { %812 = vmatpush3.bf16.msra.mxu1 %v897_v20  ;;  %773 = vmatprep.subr.bf16.mxu0 %v898_v21  ;;  %v939_v59 = vld [vmem:[%s1184_s0 + $0x60] ss:$20 sps:$4 sm:$0xff]   ;;  %v118_v62 = vld [vmem:[%s1185_s2 + $0x38] sm:$0xff] }
  0x16   :  { %813 = vmatprep.subr.bf16.mxu1 %v899_v22  ;;  %136 = vperm.xlu1 %877, %v114_v54   ;;  %v940_v63 = vld [vmem:[%s1184_s0 + $0x38] ss:$20 sps:$4 sm:$0xff]   ;;  %v941_v0 = vld [vmem:[%s1184_s0 + $0x88] ss:$20 sps:$4 sm:$0xff]  }
  0x17   :  { %126 = vperm.xlu0 %876, %v112_v53  }
  0x18   :  { %774 = vmatpush3.bf16.msra.mxu0 %v900_v23 }
  0x19   :  { %814 = vmatpush3.bf16.msra.mxu1 %v901_v24  ;;  %775 = vmatprep.subr.bf16.mxu0 %v902_v25 }
  0x1a   :  { %815 = vmatprep.subr.bf16.mxu1 %v903_v26  ;;  %146 = vperm.xlu1 %877, %v116_v60  }
  0x1b   :  { %141 = vperm.xlu0 %876, %v115_v58  }
  0x1c   :  { %776 = vmatpush3.bf16.msra.mxu0 %v904_v27 }
  0x1d   :  { %816 = vmatpush3.bf16.msra.mxu1 %v905_v28  ;;  %777 = vmatprep.subr.bf16.mxu0 %v906_v29 }
  0x1e   :  { %817 = vmatprep.subr.bf16.mxu1 %v907_v30  ;;  %156 = vperm.xlu1 %877, %v118_v62  }
  0x1f   :  { %151 = vperm.xlu0 %876, %v117_v61  }
  0x20   :  { %778 = vmatpush3.bf16.msra.mxu0 %v908_v31 }
  0x21   :  { %818 = vmatpush3.bf16.msra.mxu1 %v909_v32  ;;  %851 = vmatprep.subr.bf16.mxu0 %v916_v37 }
  0x22   :  { %867 = vmatprep.subr.bf16.mxu1 %v916_v37 }
  0x23   :  { %521 = vmatmul.mubr.bf16.vlgmr.msra.gmra.mxu0 %v910_v33 }
  0x24   :  { %586 = vmatmul.mubr.bf16.vlgmr.msra.gmra.mxu1 %v913_v35  ;;  %852 = vmatpush3.bf16.msra.mxu0 %v916_v37 }
  0x25   :  { %871 = vmatpush3.bf16.msra.mxu1 %v916_v37  ;;  %528 = vmatprep.mubr.bf16.mxu0 %v917_v38 }
  0x26   :  { %593 = vmatprep.mubr.bf16.mxu1 %v919_v39  ;;  %853 = vmatprep.subr.bf16.mxu0 %v923_v40 }
  0x27   :  { %868 = vmatprep.subr.bf16.mxu1 %v923_v40 }
  0x28   :  { %854 = vmatpush3.bf16.msra.mxu0 %v923_v40 }
  0x29   :  { %872 = vmatpush3.bf16.msra.mxu1 %v923_v40  ;;  %855 = vmatprep.subr.bf16.mxu0 %v930_v45 }
  0x2a   :  { %869 = vmatprep.subr.bf16.mxu1 %v930_v45 }
  0x2b   :  { %529 = vmatmul.mubr.bf16.gmra.mxu0 %v921_v41 }
  0x2c   :  { %594 = vmatmul.mubr.bf16.gmra.mxu1 %v922_v42  ;;  %536 = vmatprep.mubr.bf16.mxu0 %v924_v43 }
  0x2d   :  { %601 = vmatprep.mubr.bf16.mxu1 %v926_v44  ;;  %856 = vmatpush3.bf16.msra.mxu0 %v930_v45 }
  0x2e   :  { %873 = vmatpush3.bf16.msra.mxu1 %v930_v45  ;;  %857 = vmatprep.subr.bf16.mxu0 %v937_v46 }
  0x2f   :  { %870 = vmatprep.subr.bf16.mxu1 %v937_v46 }
  0x31   :  { %858 = vmatpush3.bf16.msra.mxu0 %v937_v46 }
  0x32   :  { %874 = vmatpush3.bf16.msra.mxu1 %v937_v46 }
  0x33   :  { %537 = vmatmul.mubr.bf16.gmra.mxu0 %v928_v47 }
  0x34   :  { %602 = vmatmul.mubr.bf16.gmra.mxu1 %v929_v48  ;;  %544 = vmatprep.mubr.bf16.mxu0 %v931_v49 }
  0x35   :  { %609 = vmatprep.mubr.bf16.mxu1 %v933_v50 }
  0x3b   :  { %545 = vmatmul.mubr.bf16.gmra.mxu0 %v935_v55 }
  0x3c   :  { %610 = vmatmul.mubr.bf16.gmra.mxu1 %v936_v56  ;;  %859 = vmatprep.mubr.msk.bf16.mxu0 %vm475_vm0, %v938_v57 }
  0x3d   :  { %863 = vmatprep.mubr.msk.bf16.mxu1 %vm475_vm0, %v939_v59 }
  0x43   :  { %860 = vmatmul.mubr.msk.bf16.vlgmr.msra.gmra.mxu0 %vm475_vm0, %v940_v63 }
  0x44   :  { %864 = vmatmul.mubr.msk.bf16.vlgmr.msra.gmra.mxu1 %vm475_vm0, %v941_v0 }
  0x8d   :  { %v132_v16 = vpop.permute.xlu1 %131 }
  0x8e   :  { %v122_v13 = vpop.permute.xlu0 %121 }
  0x91   :  { %v137_v24 = vpop.permute.xlu1 %136 }
  0x92   :  { %v127_v21 = vpop.permute.xlu0 %126 }
  0x95   :  { %v147_v35 = vpop.permute.xlu1 %146 }
  0x96   :  { %v142_v27 = vpop.permute.xlu0 %141 }
  0x99   :  { %v157_v60 = vpop.permute.xlu1 %156 }
  0x9a   :  { %v152_v43 = vpop.permute.xlu0 %151 }
  0xe3   :  { %v779_v1 = vpop.f32.mrf.mxu0 }
  0xe4   :  { %v819_v2 = vpop.f32.mrf.mxu1 }
  0xe5   :  { %v780_v3 = vpop.f32.mrf.mxu0 }
  0xe6   :  { %v820_v4 = vpop.f32.mrf.mxu1  ;;  %v781_v31 = vadd.f32 %v780_v3, %v779_v1 }
  0xe7   :  { %v782_v5 = vpop.f32.mrf.mxu0  ;;  %v821_v49 = vadd.f32 %v820_v4, %v819_v2 }
  0xe8   :  { %v822_v6 = vpop.f32.mrf.mxu1  ;;  %v523_v41 = vadd.f32 %v781_v31, %v122_v13 }
  0xe9   :  { %v783_v7 = vpop.f32.mrf.mxu0 }
  0xea   :  { %v823_v8 = vpop.f32.mrf.mxu1  ;;  %v784_v42 = vadd.f32 %v783_v7, %v782_v5  ;;  %v588_v62 = vadd.f32 %v821_v49, %v523_v41 }
  0xeb   :  { %v785_v9 = vpop.f32.mrf.mxu0  ;;  %v824_v7 = vadd.f32 %v823_v8, %v822_v6 }
  0xec   :  { %v825_v10 = vpop.f32.mrf.mxu1  ;;  %v526_v58 = vadd.f32 %v784_v42, %v127_v21 }
  0xed   :  { %v786_v11 = vpop.f32.mrf.mxu0 }
  0xee   :  { %v826_v12 = vpop.f32.mrf.mxu1  ;;  %v787_v29 = vadd.f32 %v786_v11, %v785_v9  ;;  %v591_v8 = vadd.f32 %v824_v7, %v526_v58 }
  0xef   :  { %v788_v14 = vpop.f32.mrf.mxu0  ;;  %v827_v45 = vadd.f32 %v826_v12, %v825_v10 }
  0xf0   :  { %v828_v15 = vpop.f32.mrf.mxu1  ;;  %v531_v37 = vadd.f32 %v787_v29, %v132_v16 }
  0xf1   :  { %v789_v17 = vpop.f32.mrf.mxu0 }
  0xf2   :  { %v829_v18 = vpop.f32.mrf.mxu1  ;;  %v790_v38 = vadd.f32 %v789_v17, %v788_v14  ;;  %v596_v56 = vadd.f32 %v827_v45, %v531_v37 }
  0xf3   :  { %v791_v19 = vpop.f32.mrf.mxu0  ;;  %v830_v63 = vadd.f32 %v829_v18, %v828_v15 }
  0xf4   :  { %v831_v20 = vpop.f32.mrf.mxu1  ;;  %v534_v53 = vadd.f32 %v790_v38, %v137_v24 }
  0xf5   :  { %v792_v22 = vpop.f32.mrf.mxu0 }
  0xf6   :  { %v832_v23 = vpop.f32.mrf.mxu1  ;;  %v793_v34 = vadd.f32 %v792_v22, %v791_v19  ;;  %v599_v14 = vadd.f32 %v830_v63, %v534_v53 }
  0xf7   :  { %v794_v25 = vpop.f32.mrf.mxu0  ;;  %v833_v59 = vadd.f32 %v832_v23, %v831_v20 }
  0xf8   :  { %v834_v26 = vpop.f32.mrf.mxu1  ;;  %v539_v50 = vadd.f32 %v793_v34, %v142_v27 }
  0xf9   :  { %v795_v28 = vpop.f32.mrf.mxu0 }
  0xfa   :  { %v835_v30 = vpop.f32.mrf.mxu1  ;;  %v796_v51 = vadd.f32 %v795_v28, %v794_v25  ;;  %v604_v10 = vadd.f32 %v833_v59, %v539_v50 }
  0xfb   :  { %v797_v32 = vpop.f32.mrf.mxu0  ;;  %v836_v17 = vadd.f32 %v835_v30, %v834_v26 }
  0xfc   :  { %v837_v33 = vpop.f32.mrf.mxu1  ;;  %v542_v2 = vadd.f32 %v796_v51, %v147_v35 }
  0xfd   :  { %v798_v36 = vpop.f32.mrf.mxu0 }
  0xfe   :  { %v799_v39 = vadd.f32 %v798_v36, %v797_v32  ;;  %v838_v40 = vpop.f32.mrf.mxu1  ;;  %v607_v25 = vadd.f32 %v836_v17, %v542_v2 }
  0xff   :  { %v800_v44 = vpop.f32.mrf.mxu0  ;;  %v839_v47 = vadd.f32 %v838_v40, %v837_v33 }
 0x100   :  { %v547_v46 = vadd.f32 %v799_v39, %v152_v43  ;;  %v840_v48 = vpop.f32.mrf.mxu1 }
 0x101   :  { %v801_v52 = vpop.f32.mrf.mxu0 }
 0x102   :  { %v802_v54 = vadd.f32 %v801_v52, %v800_v44  ;;  %v841_v55 = vpop.f32.mrf.mxu1  ;;  %v612_v57 = vadd.f32 %v839_v47, %v547_v46 }
 0x103   :  { %v861_v61 = vpop.f32.mrf.mxu0  ;;  %v842_v1 = vadd.f32 %v841_v55, %v840_v48 }
 0x104   :  { %v550_v0 = vadd.f32 %v802_v54, %v157_v60  ;;  %v661_v3 = vadd.f32 %v861_v61, %v596_v56  ;;  %v865_v5 = vpop.f32.mrf.mxu1 }
 0x105   :  { %v677_v4 = vadd.f32 %v865_v5, %v612_v57  ;;  %v652_v9 = vpop.f32.mrf.mxu0 }
 0x106   :  { %v685_v11 = vmax.f32 %v661_v3, 0.0  ;;  %v653_v12 = vadd.f32 %v652_v9, %v588_v62  ;;  %v668_v13 = vpop.f32.mrf.mxu1  ;;  %v615_v16 = vadd.f32 %v842_v1, %v550_v0 }
 0x107   :  { %v689_v19 = vmax.f32 %v677_v4, 0.0  ;;  %v669_v20 = vadd.f32 %v668_v13, %v604_v10  ;;  %v862_v21 = vpop.f32.mrf.mxu0 }
 0x108   :  { %693 = vst [vmem:[%s1186_s3 + $0x10] sm:$0xff] %v685_v11  ;;  %v683_v15 = vmax.f32 %v653_v12, 0.0  ;;  %v664_v18 = vadd.f32 %v862_v21, %v599_v14  ;;  %v866_v6 = vpop.f32.mrf.mxu1 }
 0x109   :  { %697 = vst [vmem:[%s1186_s3 + $0x30] sm:$0xff] %v689_v19  ;;  %v687_v22 = vmax.f32 %v669_v20, 0.0  ;;  %v680_v23 = vadd.f32 %v866_v6, %v615_v16  ;;  %v655_v24 = vpop.f32.mrf.mxu0 }
 0x10a   :  { %691 = vst [vmem:[%s1186_s3] sm:$0xff] %v683_v15  ;;  %v686_v26 = vmax.f32 %v664_v18, 0.0  ;;  %v656_v27 = vadd.f32 %v655_v24, %v591_v8  ;;  %v671_v28 = vpop.f32.mrf.mxu1 }
 0x10b   :  { %695 = vst [vmem:[%s1186_s3 + $0x20] sm:$0xff] %v687_v22  ;;  %v690_v29 = vmax.f32 %v680_v23, 0.0  ;;  %v672_v30 = vadd.f32 %v671_v28, %v607_v25 }
 0x10c   :  { %694 = vst [vmem:[%s1186_s3 + $0x18] sm:$0xff] %v686_v26  ;;  %v684_v31 = vmax.f32 %v656_v27, 0.0 }
 0x10d   :  { %698 = vst [vmem:[%s1186_s3 + $0x38] sm:$0xff] %v690_v29  ;;  %v688_v32 = vmax.f32 %v672_v30, 0.0 }
 0x10e   :  { %692 = vst [vmem:[%s1186_s3 + $0x8] sm:$0xff] %v684_v31 }
 0x10f   :  { %696 = vst [vmem:[%s1186_s3 + $0x28] sm:$0xff] %v688_v32 }

</bundles_post_ra>
